<compile_context>
chip_gen: v7x
topology: tpu7x:2x2x1
jax: 0.10.0
libtpu: 0.0.40
codegen_flags: <defaults>
</compile_context>

<pallas_src>
import functools

import jax
import jax.numpy as jnp
from jax.experimental import pallas as pl
from jax.experimental.pallas import tpu as pltpu

LANE = 128   # fused hidden width: both branches (2*H lanes) share one 128-lane tile


def critic_kernel(sh_ref, sev_ref, w1h_ref, w1e_ref, w2_ref, w3_ref, q_ref):
    # Layer 1: split-W1 first layer.  h-branch lives in lanes [0, H), eva-branch
    # in lanes [H, 2H); the zero blocks inside w1h/w1e keep the branches
    # independent, so a single matmul chain drives both.
    x = jnp.tanh(
        jnp.dot(sh_ref[...], w1h_ref[...], preferred_element_type=jnp.float32)
        + jnp.dot(sev_ref[...], w1e_ref[...], preferred_element_type=jnp.float32)
    )                                                              # (TB, 128) f32
    # Layers 2 & 3 (block-diagonal).  Cast activations to bf16 so the MXU runs
    # its native single-pass path; accumulate in f32, tanh in f32 (portable to
    # v5e which has no bf16 VPU/EUP).
    x = jnp.tanh(jnp.dot(x.astype(jnp.bfloat16), w2_ref[...],
                         preferred_element_type=jnp.float32))      # (TB, 128) f32
    x = jnp.tanh(jnp.dot(x.astype(jnp.bfloat16), w3_ref[...],
                         preferred_element_type=jnp.float32))      # (TB, 2)   f32
    # col 0 = feature_h, col 1 = feature_eva
    q_ref[...] = x[:, 0:1] * x[:, 1:2]


def init_critic_params(key, hidden):
    # Mirrors init_linear: nn.init.normal_(weight, mean=0, std=0.01), no biases.
    ks = jax.random.split(key, 6)
    std = 0.01
    # PyTorch nn.Linear weight is (out, in); we store the transpose (in, out).
    return {
        "wh1": std * jax.random.normal(ks[0], (2, hidden), jnp.float32),
        "wh2": std * jax.random.normal(ks[1], (hidden, hidden), jnp.float32),
        "wh3": std * jax.random.normal(ks[2], (hidden, 1), jnp.float32),
        "we1": std * jax.random.normal(ks[3], (4, hidden), jnp.float32),
        "we2": std * jax.random.normal(ks[4], (hidden, hidden), jnp.float32),
        "we3": std * jax.random.normal(ks[5], (hidden, 1), jnp.float32),
    }


def fuse_critic_params(params, dtype=jnp.bfloat16):
    """Build block-diagonal, 128-lane-padded fused weights (done once, outside the kernel).

    W1 is kept split into (w1h, w1e) so s_h / s_ev can be fed to the kernel
    directly without a concatenated-input copy.  tanh(0)=0 keeps the padded
    lanes inert through the whole block-diagonal network (valid only while the
    layers stay bias-free, as in the PyTorch module).
    """
    H = params["wh1"].shape[1]
    assert 2 * H <= LANE, "fused hidden width 2*H must fit in one 128-lane tile"

    w1h = jnp.zeros((2, LANE), jnp.float32).at[:, 0:H].set(params["wh1"])          # s_h  -> h lanes
    w1e = jnp.zeros((4, LANE), jnp.float32).at[:, H:2 * H].set(params["we1"])      # s_ev -> ev lanes

    w2 = jnp.zeros((LANE, LANE), jnp.float32)
    w2 = w2.at[0:H, 0:H].set(params["wh2"]).at[H:2 * H, H:2 * H].set(params["we2"])

    w3 = jnp.zeros((LANE, 2), jnp.float32)
    w3 = w3.at[0:H, 0:1].set(params["wh3"])          # -> col 0 (feature_h)
    w3 = w3.at[H:2 * H, 1:2].set(params["we3"])      # -> col 1 (feature_eva)

    return tuple(w.astype(dtype) for w in (w1h, w1e, w2, w3))


def _round_up(x, m):
    return (x + m - 1) // m * m


@functools.partial(jax.jit, static_argnames=("tb", "core_parallel"))
def critic_forward(s_h, s_ev, w1h, w1e, w2, w3, tb=8192, core_parallel=False):
    """q1 = Critic(s_h, s_ev) using the fused weights from fuse_critic_params.

    tb: target batch tile (rows per grid step).  Large by default to amortize
        per-grid-step overhead; always rounded up to a multiple of 8.
    core_parallel: set True on v7x (2 TensorCores) when the grid has >= 2 steps.
    """
    B = s_h.shape[0]
    TB = _round_up(min(tb, B), 8)          # sublane-aligned batch tile
    Bp = _round_up(B, TB)                  # padded batch
    grid = Bp // TB

    # bf16 halves the input DMA bytes.  In a real PPO pipeline, supply bf16
    # upstream so this convert fuses into the producer instead of materializing.
    s_h = s_h.astype(jnp.bfloat16)
    s_ev = s_ev.astype(jnp.bfloat16)
    if Bp != B:  # pad only the non-divisible case; tanh(0)=0 keeps pad rows inert
        s_h = jnp.pad(s_h, ((0, Bp - B), (0, 0)))
        s_ev = jnp.pad(s_ev, ((0, Bp - B), (0, 0)))

    # Advisory cost estimate for XLA's scheduler around the custom call.
    flops = 2 * Bp * (2 * LANE + 4 * LANE + LANE * LANE + LANE * 2)
    transcendentals = Bp * (2 * LANE + 2)
    bytes_accessed = (Bp * (6 * 2 + 4)
                      + 2 * (w1h.size + w1e.size + w2.size + w3.size))
    cost = pl.CostEstimate(flops=flops, transcendentals=transcendentals,
                           bytes_accessed=bytes_accessed)

    batch_sem = pltpu.CORE_PARALLEL if core_parallel else pltpu.PARALLEL

    q = pl.pallas_call(
        critic_kernel,
        out_shape=jax.ShapeDtypeStruct((Bp, 1), jnp.float32),
        grid=(grid,),
        in_specs=[
            pl.BlockSpec((TB, 2), lambda i: (i, 0)),       # s_h tile (pipelined)
            pl.BlockSpec((TB, 4), lambda i: (i, 0)),       # s_ev tile (pipelined)
            pl.BlockSpec((2, LANE), lambda i: (0, 0)),     # weights: VMEM-resident
            pl.BlockSpec((4, LANE), lambda i: (0, 0)),     #   across all grid steps
            pl.BlockSpec((LANE, LANE), lambda i: (0, 0)),
            pl.BlockSpec((LANE, 2), lambda i: (0, 0)),
        ],
        out_specs=pl.BlockSpec((TB, 1), lambda i: (i, 0)),
        compiler_params=pltpu.CompilerParams(
            dimension_semantics=(batch_sem,),
            vmem_limit_bytes=32 * 1024 * 1024),   # safe on v5e/v6e (128 MiB) and v7x (64 MiB)
        cost_estimate=cost,
    )(s_h, s_ev, w1h, w1e, w2, w3)

    return q[:B]


def reference_forward(s_h, s_ev, params):
    h = jnp.tanh(s_h @ params["wh1"])
    h = jnp.tanh(h @ params["wh2"])
    h = jnp.tanh(h @ params["wh3"])
    e = jnp.tanh(s_ev @ params["we1"])
    e = jnp.tanh(e @ params["we2"])
    e = jnp.tanh(e @ params["we3"])
    return h * e


if __name__ == "__main__":
    key = jax.random.PRNGKey(0)
    k_p, k_h, k_e = jax.random.split(key, 3)

    B, hidden = 8, 32
    params = init_critic_params(k_p, hidden)
    w1h, w1e, w2, w3 = fuse_critic_params(params)

    s_h = jax.random.normal(k_h, (B, 2), jnp.float32)
    s_ev = jax.random.normal(k_e, (B, 4), jnp.float32)

    q1 = critic_forward(s_h, s_ev, w1h, w1e, w2, w3)
    q1 = jax.block_until_ready(q1)

    ref = reference_forward(s_h, s_ev, params)   # f32 reference (bf16 kernel weights)
    assert q1.shape == (B, 1)
    assert jnp.allclose(q1, ref, atol=1e-4, rtol=1e-2), (
        f"max abs diff {jnp.max(jnp.abs(q1 - ref))}")

    print("KERNEL_OK")
</pallas_src>

<mosaic_0001>
module attributes {stable_mosaic.version = 11 : i64} {
  func.func @critic_kernel(%arg0: i32, %arg1: memref<8x2xbf16, #tpu.memory_space<vmem>>, %arg2: memref<8x4xbf16, #tpu.memory_space<vmem>>, %arg3: memref<2x128xbf16, #tpu.memory_space<vmem>>, %arg4: memref<4x128xbf16, #tpu.memory_space<vmem>>, %arg5: memref<128x128xbf16, #tpu.memory_space<vmem>>, %arg6: memref<128x2xbf16, #tpu.memory_space<vmem>>, %arg7: memref<8x1xf32, #tpu.memory_space<vmem>>) attributes {dimension_semantics = [#tpu.dimension_semantics<parallel>], iteration_bounds = array<i64: 1>, scalar_prefetch = 0 : i64, scratch_operands = 0 : i64, tpu.core_type = #tpu.core_type<tc>, window_params = [{transform_indices = @transform_0, window_bounds = array<i64: 8, 2>}, {transform_indices = @transform_1, window_bounds = array<i64: 8, 4>}, {pipeline_mode = #tpu.pipeline_mode<synchronous>, transform_indices = @transform_2, window_bounds = array<i64: 2, 128>}, {pipeline_mode = #tpu.pipeline_mode<synchronous>, transform_indices = @transform_3, window_bounds = array<i64: 4, 128>}, {pipeline_mode = #tpu.pipeline_mode<synchronous>, transform_indices = @transform_4, window_bounds = array<i64: 128, 128>}, {pipeline_mode = #tpu.pipeline_mode<synchronous>, transform_indices = @transform_5, window_bounds = array<i64: 128, 2>}, {transform_indices = @transform_6, window_bounds = array<i64: 8, 1>}]} {
    %c0 = arith.constant 0 : index
    %c0_0 = arith.constant 0 : index
    %0 = vector.load %arg1[%c0, %c0_0] : memref<8x2xbf16, #tpu.memory_space<vmem>>, vector<8x2xbf16>
    %c0_1 = arith.constant 0 : index
    %c0_2 = arith.constant 0 : index
    %1 = vector.load %arg3[%c0_1, %c0_2] : memref<2x128xbf16, #tpu.memory_space<vmem>>, vector<2x128xbf16>
    %cst = arith.constant dense<0.000000e+00> : vector<8x128xf32>
    %2 = tpu.matmul %0, %1, %cst {dimension_numbers = #tpu.dot_dimension_numbers<[1], [0], [0], [1], [0, 0, 1, 1], [], []>} : vector<8x2xbf16>, vector<2x128xbf16>, vector<8x128xf32> -> vector<8x128xf32>
    %c0_3 = arith.constant 0 : index
    %c0_4 = arith.constant 0 : index
    %3 = vector.load %arg2[%c0_3, %c0_4] : memref<8x4xbf16, #tpu.memory_space<vmem>>, vector<8x4xbf16>
    %c0_5 = arith.constant 0 : index
    %c0_6 = arith.constant 0 : index
    %4 = vector.load %arg4[%c0_5, %c0_6] : memref<4x128xbf16, #tpu.memory_space<vmem>>, vector<4x128xbf16>
    %cst_7 = arith.constant dense<0.000000e+00> : vector<8x128xf32>
    %5 = tpu.matmul %3, %4, %cst_7 {dimension_numbers = #tpu.dot_dimension_numbers<[1], [0], [0], [1], [0, 0, 1, 1], [], []>} : vector<8x4xbf16>, vector<4x128xbf16>, vector<8x128xf32> -> vector<8x128xf32>
    %6 = arith.addf %2, %5 : vector<8x128xf32>
    %7 = math.tanh %6 : vector<8x128xf32>
    %8 = arith.truncf %7 : vector<8x128xf32> to vector<8x128xbf16>
    %c0_8 = arith.constant 0 : index
    %c0_9 = arith.constant 0 : index
    %9 = vector.load %arg5[%c0_8, %c0_9] : memref<128x128xbf16, #tpu.memory_space<vmem>>, vector<128x128xbf16>
    %cst_10 = arith.constant dense<0.000000e+00> : vector<8x128xf32>
    %10 = tpu.matmul %8, %9, %cst_10 {dimension_numbers = #tpu.dot_dimension_numbers<[1], [0], [0], [1], [0, 0, 1, 1], [], []>} : vector<8x128xbf16>, vector<128x128xbf16>, vector<8x128xf32> -> vector<8x128xf32>
    %11 = math.tanh %10 : vector<8x128xf32>
    %12 = arith.truncf %11 : vector<8x128xf32> to vector<8x128xbf16>
    %c0_11 = arith.constant 0 : index
    %c0_12 = arith.constant 0 : index
    %13 = vector.load %arg6[%c0_11, %c0_12] : memref<128x2xbf16, #tpu.memory_space<vmem>>, vector<128x2xbf16>
    %cst_13 = arith.constant dense<0.000000e+00> : vector<8x2xf32>
    %14 = tpu.matmul %12, %13, %cst_13 {dimension_numbers = #tpu.dot_dimension_numbers<[1], [0], [0], [1], [0, 0, 1, 1], [], []>} : vector<8x128xbf16>, vector<128x2xbf16>, vector<8x2xf32> -> vector<8x2xf32>
    %15 = math.tanh %14 : vector<8x2xf32>
    %16 = vector.extract_strided_slice %15 {offsets = [0, 0], sizes = [8, 1], strides = [1, 1]} : vector<8x2xf32> to vector<8x1xf32>
    %17 = vector.extract_strided_slice %15 {offsets = [0, 1], sizes = [8, 1], strides = [1, 1]} : vector<8x2xf32> to vector<8x1xf32>
    %18 = arith.mulf %16, %17 : vector<8x1xf32>
    %c0_14 = arith.constant 0 : index
    %c0_15 = arith.constant 0 : index
    %19 = vector.load %arg7[%c0_14, %c0_15] : memref<8x1xf32, #tpu.memory_space<vmem>>, vector<8x1xf32>
    tpu.vector_store %arg7[%c0_14, %c0_15], %18 {strides = array<i32>} : memref<8x1xf32, #tpu.memory_space<vmem>>, vector<8x1xf32>,
    return
  }
  func.func @transform_0(%arg0: i32) -> (i32, i32) {
    %c0_i32 = arith.constant 0 : i32
    %c0_i32_0 = arith.constant 0 : i32
    return %arg0, %c0_i32 : i32, i32
  }
  func.func @transform_1(%arg0: i32) -> (i32, i32) {
    %c0_i32 = arith.constant 0 : i32
    %c0_i32_0 = arith.constant 0 : i32
    return %arg0, %c0_i32 : i32, i32
  }
  func.func @transform_2(%arg0: i32) -> (i32, i32) {
    %c0_i32 = arith.constant 0 : i32
    %c0_i32_0 = arith.constant 0 : i32
    %c0_i32_1 = arith.constant 0 : i32
    return %c0_i32, %c0_i32_0 : i32, i32
  }
  func.func @transform_3(%arg0: i32) -> (i32, i32) {
    %c0_i32 = arith.constant 0 : i32
    %c0_i32_0 = arith.constant 0 : i32
    %c0_i32_1 = arith.constant 0 : i32
    return %c0_i32, %c0_i32_0 : i32, i32
  }
  func.func @transform_4(%arg0: i32) -> (i32, i32) {
    %c0_i32 = arith.constant 0 : i32
    %c0_i32_0 = arith.constant 0 : i32
    %c0_i32_1 = arith.constant 0 : i32
    return %c0_i32, %c0_i32_0 : i32, i32
  }
  func.func @transform_5(%arg0: i32) -> (i32, i32) {
    %c0_i32 = arith.constant 0 : i32
    %c0_i32_0 = arith.constant 0 : i32
    %c0_i32_1 = arith.constant 0 : i32
    return %c0_i32, %c0_i32_0 : i32, i32
  }
  func.func @transform_6(%arg0: i32) -> (i32, i32) {
    %c0_i32 = arith.constant 0 : i32
    %c0_i32_0 = arith.constant 0 : i32
    return %arg0, %c0_i32 : i32, i32
  }
}

</mosaic_0001>

<bundles_post_ra>
// kernel: critic_forward.1
= control target key start
LH: loop header
LB: loop body
LE: loop exit
PB: predicated region body
PF: predicated region fallthrough
CT: control target
= control target key end

     0   :  { %vm32_vm0 = vcmask 1041408   ;;  %vm80_vm1 = vcmask 1040384   ;;  %v466_v0 = vmov 0.0   ;;  %vm467_vm2 = vmmov 0   ;;  %s468_s29 = smov 127   ;;  %s593_s3 = inlined_call_operand.vmem [shape: bf16[4,128], index: 3, kind: input, shape index: {}]   ;;  %s594_s2 = inlined_call_operand.vmem [shape: bf16[2,128], index: 2, kind: input, shape index: {}]   ;;  %s595_s1 = inlined_call_operand.vmem [shape: bf16[8,4], index: 1, kind: input, shape index: {}]   ;;  %s596_s0 = inlined_call_operand.vmem [shape: bf16[8,2], index: 0, kind: input, shape index: {}]   ;;  %s597_s4 = inlined_call_operand.vmem [shape: bf16[128,128], index: 4, kind: input, shape index: {}]   ;;  %s598_s5 = inlined_call_operand.vmem [shape: bf16[128,2], index: 5, kind: input, shape index: {}]   ;;  %s599_s6 = inlined_call_operand.vmem [shape: f32[8,1], index: 6, kind: output, shape index: {}]  }
   0x1   :  { %388 = vmatprep.subr.bf16.mxu1 %v466_v0  ;;  %394 = vmatprep.subr.bf16.mxu0 %v466_v0  ;;  %v27_v1 = vld [vmem:[%s593_s3] sm:$0x3]  ;;  %vm28_vm3 = vcmask 31744   ;;  %vm76_vm4 = vcmask 15360   ;;  %v445_v8 = vld [vmem:[%s597_s4 + $0x8] sm:$0xff]   ;;  %v446_v9 = vld [vmem:[%s597_s4 + $0x10] sm:$0xff]  }
   0x2   :  { %v25_v2 = vld [vmem:[%s594_s2] sm:$0x1]  ;;  %v34_v4 = vsel %vm32_vm0, %v27_v1, 0  ;;  %390 = vmatprep.mubr.msk.bf16.mxu1 %vm467_vm2, %v466_v0  ;;  %396 = vmatprep.mubr.msk.bf16.mxu0 %vm467_vm2, %v466_v0  ;;  %v447_v10 = vld [vmem:[%s597_s4 + $0x18] sm:$0xff]   ;;  %v449_v12 = vld [vmem:[%s597_s4 + $0x28] sm:$0xff]   ;;  %vm342_vm5 = vcmask 7168  }
   0x3   :  { %v26_v3 = vld [vmem:[%s595_s1] sm:$0xf]  ;;  %v82_v5 = vsel %vm80_vm1, %v25_v2, 0  ;;  %389 = vmatpush3.bf16.msra.mxu1 %v34_v4  ;;  %v450_v13 = vld [vmem:[%s597_s4 + $0x30] sm:$0xff]   ;;  %v451_v14 = vld [vmem:[%s597_s4 + $0x38] sm:$0xff]  }
   0x4   :  { %v24_v6 = vld [vmem:[%s596_s0] sm:$0xf]  ;;  %395 = vmatpush3.bf16.msra.mxu0 %v82_v5  ;;  %400 = vmatprep.subr.bf16.mxu1 %v466_v0  ;;  %v453_v16 = vld [vmem:[%s598_s5 + $0x8] sm:$0xff]   ;;  %v454_v17 = vld [vmem:[%s598_s5 + $0x10] sm:$0xff]  }
   0x5   :  { %v444_v7 = vld [vmem:[%s597_s4] sm:$0xff]   ;;  %420 = vmatprep.subr.bf16.mxu0 %v466_v0  ;;  %v455_v18 = vld [vmem:[%s598_s5 + $0x18] sm:$0xff]   ;;  %v457_v31 = vld [vmem:[%s598_s5 + $0x28] sm:$0xff]  }
   0x6   :  { %391 = vmatmul.mubr.msk.bf16.vlgmr.msra.gmra.mrb[0].mxu1 %vm28_vm3, %v26_v3  ;;  %v448_v11 = vld [vmem:[%s597_s4 + $0x20] sm:$0xff]   ;;  %v458_v32 = vld [vmem:[%s598_s5 + $0x30] sm:$0xff]   ;;  %v459_v33 = vld [vmem:[%s598_s5 + $0x38] sm:$0xff]  }
   0x7   :  { %397 = vmatmul.mubr.msk.bf16.vlgmr.msra.gmra.mrb[0].mxu0 %vm76_vm4, %v24_v6  ;;  %401 = vmatpush3.bf16.msra.mxu1 %v444_v7  ;;  %v452_v15 = vld [vmem:[%s598_s5] sm:$0xff]  }
   0x8   :  { %416 = vmatprep.mubr.msk.bf16.mxu1 %vm467_vm2, %v466_v0  ;;  %402 = vmatprep.subr.bf16.mxu1 %v466_v0  ;;  %v456_v19 = vld [vmem:[%s598_s5 + $0x20] sm:$0xff]  }
   0x9   :  { %436 = vmatprep.mubr.msk.bf16.mxu0 %vm467_vm2, %v466_v0  ;;  %421 = vmatpush3.bf16.msra.mxu0 %v452_v15 }
   0xa   :  { %422 = vmatprep.subr.bf16.mxu0 %v466_v0 }
   0xb   :  { %403 = vmatpush3.bf16.msra.mxu1 %v445_v8 }
   0xc   :  { %404 = vmatprep.subr.bf16.mxu1 %v466_v0 }
   0xd   :  { %423 = vmatpush3.bf16.msra.mxu0 %v453_v16 }
   0xe   :  { %424 = vmatprep.subr.bf16.mxu0 %v466_v0 }
   0xf   :  { %405 = vmatpush3.bf16.msra.mxu1 %v446_v9 }
  0x10   :  { %406 = vmatprep.subr.bf16.mxu1 %v466_v0 }
  0x11   :  { %425 = vmatpush3.bf16.msra.mxu0 %v454_v17 }
  0x12   :  { %426 = vmatprep.subr.bf16.mxu0 %v466_v0 }
  0x13   :  { %407 = vmatpush3.bf16.msra.mxu1 %v447_v10 }
  0x14   :  { %408 = vmatprep.subr.bf16.mxu1 %v466_v0 }
  0x15   :  { %427 = vmatpush3.bf16.msra.mxu0 %v455_v18 }
  0x16   :  { %428 = vmatprep.subr.bf16.mxu0 %v466_v0 }
  0x17   :  { %409 = vmatpush3.bf16.msra.mxu1 %v448_v11 }
  0x18   :  { %410 = vmatprep.subr.bf16.mxu1 %v466_v0 }
  0x19   :  { %429 = vmatpush3.bf16.msra.mxu0 %v456_v19 }
  0x1a   :  { %430 = vmatprep.subr.bf16.mxu0 %v466_v0 }
  0x1b   :  { %411 = vmatpush3.bf16.msra.mxu1 %v449_v12 }
  0x1c   :  { %412 = vmatprep.subr.bf16.mxu1 %v466_v0 }
  0x1d   :  { %431 = vmatpush3.bf16.msra.mxu0 %v457_v31 }
  0x1e   :  { %432 = vmatprep.subr.bf16.mxu0 %v466_v0 }
  0x1f   :  { %413 = vmatpush3.bf16.msra.mxu1 %v450_v13 }
  0x20   :  { %414 = vmatprep.subr.bf16.mxu1 %v466_v0 }
  0x21   :  { %433 = vmatpush3.bf16.msra.mxu0 %v458_v32 }
  0x22   :  { %434 = vmatprep.subr.bf16.mxu0 %v466_v0 }
  0x23   :  { %415 = vmatpush3.bf16.msra.mxu1 %v451_v14 }
  0x25   :  { %435 = vmatpush3.bf16.msra.mxu0 %v459_v33 }
  0xd9   :  { %v70_v20 = vpop.f32.mrb[0].mxu1 }
  0xda   :  { %v118_v21 = vpop.f32.mrb[0].mxu0  ;;  %v392_v23 = vpop.f32.mrb[1].mxu1 }
  0xdb   :  { %v119_v22 = vadd.f32 %v118_v21, %v70_v20  ;;  %v398_v24 = vpop.f32.mrb[1].mxu0  ;;  %v73_v25 = vpop.f32.mrb[2].mxu1 }
  0xdc   :  { %v121_v26 = vpop.f32.mrb[2].mxu0  ;;  %v393_v27 = vpop.f32.mrb[3].mxu1 }
  0xdd   :  { %460 = vtanh.f32 %v119_v22  ;;  %v399_v28 = vpop.f32.mrb[3].mxu0 }
  0xe7   :  { %v461_v29 = vpop.eup %460 }
  0xe8   :  { %v125_v30 = vpack.c.bf16 %v461_v29, %v461_v29 }
  0xea   :  { %417 = vmatmul.mubr.bf16.vlgmr.msra.gmra.mrb[4].mxu1 %v125_v30 }
 0x1bd   :  { %v224_v34 = vpop.f32.mrb[4].mxu1 }
 0x1be   :  { %462 = vtanh.f32 %v224_v34  ;;  %v418_v35 = vpop.f32.mrb[5].mxu1 }
 0x1bf   :  { %v227_v36 = vpop.f32.mrb[6].mxu1 }
 0x1c0   :  { %v419_v37 = vpop.f32.mrb[7].mxu1 }
 0x1c8   :  { %v463_v38 = vpop.eup %462 }
 0x1c9   :  { %v231_v39 = vpack.c.bf16 %v463_v38, %v463_v38 }
 0x1cb   :  { %437 = vmatmul.mubr.bf16.vlgmr.msra.gmra.mrb[4].mxu0 %v231_v39 }
 0x29e   :  { %v330_v40 = vpop.f32.mrb[4].mxu0 }
 0x29f   :  { %464 = vtanh.f32 %v330_v40  ;;  %v438_v41 = vpop.f32.mrb[5].mxu0 }
 0x2a0   :  { %v333_v42 = vpop.f32.mrb[6].mxu0 }
 0x2a1   :  { %v439_v43 = vpop.f32.mrb[7].mxu0 }
 0x2a9   :  { %v465_v44 = vpop.eup %464 }
 0x2aa   :  { %338 = vrot.lane.b32.xlu0 %v465_v44, %s468_s29 }
 0x31c   :  { %v339_v45 = vpop.permute.xlu0 %338 }
 0x31d   :  { %v341_v46 = vmul.f32 %v465_v44, %v339_v45 }
 0x31f   :  { %343 = vst.msk [vmem:[%s599_s6] sm:$0xff] %vm342_vm5, %v341_v46 }

</bundles_post_ra>
